<compile_context>
chip_gen: v6e
topology: v6e:2x2x1
jax: 0.10.0
libtpu: 0.0.40
codegen_flags: <defaults>
</compile_context>

<pallas_src>
import functools

import jax
import jax.numpy as jnp
from jax import lax
from jax.experimental import pallas as pl
from jax.experimental.pallas import tpu as pltpu

EPS = 1e-5
LANE = 128

_M_TILE_CANDS = (4096, 2048, 1024, 512, 384, 256, 128, 64, 32, 16, 8)


def _rup(n, m):
    return ((n + m - 1) // m) * m


def _pick_m_tile(m, max_tile):
    cands = [t for t in _M_TILE_CANDS if t <= max_tile]
    for t in cands:                      # prefer >= 2 grid steps (v7x: 2 TensorCores)
        if m % t == 0 and m // t >= 2:
            return t
    for t in cands:
        if m % t == 0:
            return t
    return m


def _pick_cout_tile(cout_p):
    """256-wide Cout tiles fill the v6e/v7x 256x256 MXU; v5e keeps 128."""
    wide = True
    try:
        kind = jax.devices()[0].device_kind.lower()
        if "v5 lite" in kind or "v5e" in kind:
            wide = False
    except Exception:
        pass
    return 256 if (wide and cout_p % 256 == 0) else LANE


def _compiler_params(*sem, est_block_bytes=None):
    # Only raise the VMEM limit when the (double-buffered) per-step footprint
    # would exceed the 32 MiB scoped default; cap at v7x's 64 MiB physical.
    kwargs = {}
    if est_block_bytes is not None:
        need = int(est_block_bytes * 2.5)
        if need > (32 << 20):
            kwargs["vmem_limit_bytes"] = min(need, 64 << 20)
    return pltpu.CompilerParams(dimension_semantics=tuple(sem), **kwargs)


# ---------------------------------------------------------------------------
# Pass 1a: 1x1 conv as a flat tiled matmul + per-tile BN statistics
# ---------------------------------------------------------------------------
def _mm_stats_kernel(x_ref, w_ref, y_ref, st_ref):
    # x_ref: (TM, Cin)   w_ref: (Cin, TCO)   y_ref: (TM, TCO)   st_ref: (1, 2, TCO)
    acc = jnp.dot(x_ref[...], w_ref[...], preferred_element_type=jnp.float32)
    y_ref[...] = acc.astype(y_ref.dtype)
    st_ref[0, 0:1, :] = jnp.sum(acc, axis=0, keepdims=True)
    st_ref[0, 1:2, :] = jnp.sum(acc * acc, axis=0, keepdims=True)


def matmul_stats_pallas(x2d, w2d):
    """(M, Cin) @ (Cin, Cout) with bf16 MXU inputs, f32 accumulation, and
    per-M-tile partial BN statistics (sum, sum of squares)."""
    m, cin = x2d.shape
    _, cout = w2d.shape
    tco = _pick_cout_tile(cout)
    tm = _pick_m_tile(m, 512)
    n_m, n_co = m // tm, cout // tco
    blk_bytes = 2 * (tm * cin + cin * tco + tm * tco) + 4 * tm * tco
    y, stats = pl.pallas_call(
        _mm_stats_kernel,
        out_shape=(jax.ShapeDtypeStruct((m, cout), jnp.bfloat16),
                   jax.ShapeDtypeStruct((n_m, 2, cout), jnp.float32)),
        grid=(n_co, n_m),        # Cout outermost: weight tile stays VMEM-resident
        in_specs=[
            pl.BlockSpec((tm, cin), lambda c, i: (i, 0)),
            pl.BlockSpec((cin, tco), lambda c, i: (0, c)),
        ],
        out_specs=(
            pl.BlockSpec((tm, tco), lambda c, i: (i, c)),
            pl.BlockSpec((1, 2, tco), lambda c, i: (i, 0, c)),
        ),
        compiler_params=_compiler_params("parallel", "parallel",
                                         est_block_bytes=blk_bytes),
    )(x2d.astype(jnp.bfloat16), w2d.astype(jnp.bfloat16))
    return y, stats


# ---------------------------------------------------------------------------
# Pass 1b: kxk conv (phase-decimated, contiguous taps) + per-tile BN statistics
# ---------------------------------------------------------------------------
def _convk_stats_kernel(x_ref, w_ref, y_ref, st_ref, *, kh, kw, stride, ho, wo, th):
    # x_ref: (1, s, s, Hph, Wph, Cin) phase-decomposed, spatially padded slab
    # w_ref: (kh, kw, Cin, TCO)   y_ref: (ho*wo, TCO)   st_ref: (1, 2, TCO)
    s = stride
    tco = y_ref.shape[-1]
    n_ro = ho // th
    s1 = jnp.zeros((1, tco), jnp.float32)
    s2 = jnp.zeros((1, tco), jnp.float32)
    # Static row tiling keeps each f32 accumulator small so it stays resident
    # across the kh*kw tap loop instead of spilling and round-tripping VMEM.
    for t in range(n_ro):
        acc = jnp.zeros((th * wo, tco), jnp.float32)
        for i in range(kh):
            for j in range(kw):
                r, q = i % s, i // s
                v, u = j % s, j // s
                # contiguous window: phase (r, v), rows [t*th+q, +th), cols [u, +wo)
                win = x_ref[0, r, v, pl.ds(t * th + q, th), pl.ds(u, wo), :]
                acc = acc + jnp.dot(win.reshape(th * wo, -1), w_ref[i, j],
                                    preferred_element_type=jnp.float32)
        y_ref[pl.ds(t * th * wo, th * wo), :] = acc.astype(y_ref.dtype)
        s1 = s1 + jnp.sum(acc, axis=0, keepdims=True)
        s2 = s2 + jnp.sum(acc * acc, axis=0, keepdims=True)
    st_ref[0, 0:1, :] = s1
    st_ref[0, 1:2, :] = s2


def convk_stats_pallas(x_nhwc, w_hwio, *, stride, padding, out_h, out_w):
    """kxk conv (no bias).  Returns (flat (N*out_h*out_w, Cout) bf16 pre-BN y,
    per-batch-element partial BN stats (N, 2, Cout) f32)."""
    n, h, w, cin = x_nhwc.shape
    kh, kw, _, cout = w_hwio.shape
    s = stride

    # Phase-decompose the spatially padded input once in XLA so every in-kernel
    # tap is a contiguous window read (no strided loads).
    hph = (kh - 1) // s + out_h
    wph = _rup((kw - 1) // s + out_w, 8)        # sublane-friendly W
    hp_need, wp_need = s * hph, s * wph
    xp = jnp.pad(x_nhwc, ((0, 0),
                          (padding, max(hp_need - h - padding, 0)),
                          (padding, max(wp_need - w - padding, 0)),
                          (0, 0)))
    xp = xp[:, :hp_need, :wp_need, :]
    xp = xp.reshape(n, hph, s, wph, s, cin).transpose(0, 2, 4, 1, 3, 5)
    # xp[b, r, v, a, c, :] == padded[b, a*s + r, c*s + v, :]

    tco = _pick_cout_tile(cout)
    n_co = cout // tco
    # Row-tile the accumulator to <= ~128 KiB live.
    max_rows = max(1, (128 * 1024) // (out_w * tco * 4))
    th = 1
    for cand in range(min(out_h, max_rows), 0, -1):
        if out_h % cand == 0:
            th = cand
            break

    kern = functools.partial(_convk_stats_kernel, kh=kh, kw=kw, stride=s,
                             ho=out_h, wo=out_w, th=th)
    blk_bytes = (2 * (s * s * hph * wph * cin + kh * kw * cin * tco
                      + out_h * out_w * tco)
                 + 4 * th * out_w * tco)
    y, stats = pl.pallas_call(
        kern,
        out_shape=(jax.ShapeDtypeStruct((n * out_h * out_w, cout), jnp.bfloat16),
                   jax.ShapeDtypeStruct((n, 2, cout), jnp.float32)),
        grid=(n_co, n),      # Cout outermost: weight tile DMAed once per Cout tile
        in_specs=[
            pl.BlockSpec((1, s, s, hph, wph, cin), lambda c, b: (b, 0, 0, 0, 0, 0)),
            pl.BlockSpec((kh, kw, cin, tco), lambda c, b: (0, 0, 0, c)),
        ],
        out_specs=(
            pl.BlockSpec((out_h * out_w, tco), lambda c, b: (b, c)),
            pl.BlockSpec((1, 2, tco), lambda c, b: (b, 0, c)),
        ),
        compiler_params=_compiler_params("parallel", "parallel",
                                         est_block_bytes=blk_bytes),
    )(xp.astype(jnp.bfloat16), w_hwio.astype(jnp.bfloat16))
    return y, stats


# ---------------------------------------------------------------------------
# BN scale/shift from partial statistics (tiny O(C) reduction, done in XLA)
# ---------------------------------------------------------------------------
def _bn_scale_shift(stats, m_total, gamma, beta, cpad):
    g = jnp.pad(gamma.astype(jnp.float32), (0, cpad - gamma.shape[0]))
    b = jnp.pad(beta.astype(jnp.float32), (0, cpad - beta.shape[0]))
    s = jnp.sum(stats, axis=0)                                  # (2, Cp)
    mean = s[0] / m_total
    var = jnp.maximum(s[1] / m_total - mean * mean, 0.0)        # biased variance
    scale = g * lax.rsqrt(var + EPS)
    shift = b - mean * scale
    return scale.reshape(1, -1), shift.reshape(1, -1)


# ---------------------------------------------------------------------------
# Pass 2: apply BN affine (+ residual branch BN) (+ ReLU), wide lane-dense tiles
# ---------------------------------------------------------------------------
def _bn_apply_kernel(y_ref, sc_ref, sh_ref, o_ref, *, relu):
    y = y_ref[...].astype(jnp.float32) * sc_ref[...] + sh_ref[...]
    if relu:
        y = jnp.maximum(y, 0.0)
    o_ref[...] = y.astype(o_ref.dtype)


def _bn_add_relu_kernel(y_ref, sc_ref, sh_ref, ys_ref, scs_ref, shs_ref, o_ref):
    main = y_ref[...].astype(jnp.float32) * sc_ref[...] + sh_ref[...]
    short = ys_ref[...].astype(jnp.float32) * scs_ref[...] + shs_ref[...]
    o_ref[...] = jnp.maximum(main + short, 0.0).astype(o_ref.dtype)


def _pass2_tiles(m, c, out_bytes):
    if c <= 512:
        tc = c
    elif c % 512 == 0:
        tc = 512
    elif c % 256 == 0:
        tc = 256
    else:
        tc = LANE
    max_tm = max(8, (2 << 20) // (tc * out_bytes))   # keep blocks in ~0.5-2 MiB
    tm = _pick_m_tile(m, max_tm)
    return tm, tc


def bn_apply_pallas(y, scale, shift, *, relu, out_dtype=jnp.bfloat16):
    m, c = y.shape
    tm, tc = _pass2_tiles(m, c, jnp.dtype(out_dtype).itemsize)
    full = pl.BlockSpec((tm, tc), lambda j, i: (i, j))
    bcast = pl.BlockSpec((1, tc), lambda j, i: (0, j))
    return pl.pallas_call(
        functools.partial(_bn_apply_kernel, relu=relu),
        out_shape=jax.ShapeDtypeStruct((m, c), out_dtype),
        grid=(c // tc, m // tm),   # channel axis outer: scale/shift stay resident
        in_specs=[full, bcast, bcast],
        out_specs=full,
        compiler_params=_compiler_params("parallel", "parallel"),
    )(y, scale, shift)


def bn_add_relu_pallas(y_main, sc_m, sh_m, y_short, sc_s, sh_s,
                       out_dtype=jnp.float32):
    assert y_main.shape == y_short.shape
    m, c = y_main.shape
    tm, tc = _pass2_tiles(m, c, jnp.dtype(out_dtype).itemsize)
    full = pl.BlockSpec((tm, tc), lambda j, i: (i, j))
    bcast = pl.BlockSpec((1, tc), lambda j, i: (0, j))
    return pl.pallas_call(
        _bn_add_relu_kernel,
        out_shape=jax.ShapeDtypeStruct((m, c), out_dtype),
        grid=(c // tc, m // tm),
        in_specs=[full, bcast, bcast, full, bcast, bcast],
        out_specs=full,
        compiler_params=_compiler_params("parallel", "parallel"),
    )(y_main, sc_m, sh_m, y_short, sc_s, sh_s)


# ---------------------------------------------------------------------------
# Weight prep and full block
# ---------------------------------------------------------------------------
def _prep_w_hwio(w_oihw, cin_p, cout_p):
    w = jnp.transpose(w_oihw, (2, 3, 1, 0))
    kh, kw, ci, co = w.shape
    w = jnp.pad(w, ((0, 0), (0, 0), (0, cin_p - ci), (0, cout_p - co)))
    return w.astype(jnp.bfloat16)


def _prep_w_1x1(w_oihw, cin_p, cout_p):
    co, ci = w_oihw.shape[0], w_oihw.shape[1]
    w = jnp.transpose(w_oihw[:, :, 0, 0], (1, 0))          # (Cin, Cout)
    w = jnp.pad(w, ((0, cin_p - ci), (0, cout_p - co)))
    return w.astype(jnp.bfloat16)


def resnet101_down_block(x_nchw, params, kernel_size, stride, padding):
    n, cin, h, w = x_nchw.shape
    k0, k1, k2 = kernel_size
    s0, s1, s2, s3 = stride
    p0, p1, p2 = padding

    c1 = params['w1'].shape[0]
    c2 = params['w2'].shape[0]
    c3 = params['w3'].shape[0]
    cin_p, c1p, c2p, c3p = (_rup(cin, LANE), _rup(c1, LANE),
                            _rup(c2, LANE), _rup(c3, LANE))

    # NCHW -> NHWC once; channel-pad to a lane multiple; bf16 in HBM.
    # Conv biases are intentionally unused: a per-channel constant is
    # cancelled exactly by training-mode BatchNorm's mean subtraction.
    x = jnp.transpose(x_nchw, (0, 2, 3, 1))
    x = jnp.pad(x, ((0, 0), (0, 0), (0, 0), (0, cin_p - cin))).astype(jnp.bfloat16)

    def out_hw(hin, win, k, s, p):
        return (hin + 2 * p - k) // s + 1, (win + 2 * p - k) // s + 1

    def conv_any(x_nhwc, w_oihw, k, s, p, cin_pp, cout_pp):
        if k == 1 and p == 0:
            # 1x1 conv as a flat matmul; fold the stride by decimating once in
            # XLA (single pass, no strided in-kernel reads).
            xs = x_nhwc if s == 1 else x_nhwc[:, ::s, ::s, :]
            nb, ho, wo, _ = xs.shape
            y, st = matmul_stats_pallas(xs.reshape(nb * ho * wo, cin_pp),
                                        _prep_w_1x1(w_oihw, cin_pp, cout_pp))
            return y, st, ho, wo
        ho, wo = out_hw(x_nhwc.shape[1], x_nhwc.shape[2], k, s, p)
        y, st = convk_stats_pallas(x_nhwc, _prep_w_hwio(w_oihw, cin_pp, cout_pp),
                                   stride=s, padding=p, out_h=ho, out_w=wo)
        return y, st, ho, wo

    # ---- conv1 + bn1 + relu -------------------------------------------------
    y1, st1, ho1, wo1 = conv_any(x, params['w1'], k0, s0, p0, cin_p, c1p)
    sc1, sh1 = _bn_scale_shift(st1, n * ho1 * wo1, params['g1'], params['be1'], c1p)
    a1 = bn_apply_pallas(y1, sc1, sh1, relu=True).reshape(n, ho1, wo1, c1p)

    # ---- conv2 (kxk, strided) + bn2 + relu ----------------------------------
    y2, st2, ho2, wo2 = conv_any(a1, params['w2'], k1, s1, p1, c1p, c2p)
    sc2, sh2 = _bn_scale_shift(st2, n * ho2 * wo2, params['g2'], params['be2'], c2p)
    a2 = bn_apply_pallas(y2, sc2, sh2, relu=True)           # flat (M2, c2p) bf16

    # ---- conv3 + bn3 (BN-apply deferred to the fused final kernel) ----------
    y3, st3, ho3, wo3 = conv_any(a2.reshape(n, ho2, wo2, c2p), params['w3'],
                                 k2, s2, p2, c2p, c3p)
    sc3, sh3 = _bn_scale_shift(st3, n * ho3 * wo3, params['g3'], params['be3'], c3p)

    # ---- shortcut: 1x1 stride-s3 conv + bn (BN-apply deferred too) ----------
    ye, ste, hoe, woe = conv_any(x, params['w_e'], 1, s3, 0, cin_p, c3p)
    sce, she = _bn_scale_shift(ste, n * hoe * woe, params['g_e'], params['be_e'], c3p)
    assert (hoe, woe) == (ho3, wo3), ((hoe, woe), (ho3, wo3))

    # ---- fused: bn3-apply + bn_e-apply + add + relu -------------------------
    out = bn_add_relu_pallas(y3, sc3, sh3, ye, sce, she, out_dtype=jnp.float32)
    # NHWC->NCHW + channel-unpad kept in XLA because the module contract is an
    # f32 NCHW tensor; a bf16/NHWC consumer could skip these two passes.
    out = out.reshape(n, ho3, wo3, c3p)[..., :c3]
    return jnp.transpose(out, (0, 3, 1, 2))


# ---------------------------------------------------------------------------
# Pure-JAX reference (mirrors PyTorch training-mode forward, f32/HIGHEST)
# ---------------------------------------------------------------------------
def ref_forward(x, params, kernel_size, stride, padding):
    def conv(x, w, b, s, p):
        y = lax.conv_general_dilated(x, w, (s, s), [(p, p), (p, p)],
                                     dimension_numbers=('NCHW', 'OIHW', 'NCHW'),
                                     precision=lax.Precision.HIGHEST)
        return y + b[None, :, None, None]

    def bn(y, g, be):
        mean = jnp.mean(y, axis=(0, 2, 3), keepdims=True)
        var = jnp.var(y, axis=(0, 2, 3), keepdims=True)
        return (y - mean) / jnp.sqrt(var + EPS) * g[None, :, None, None] \
            + be[None, :, None, None]

    short = bn(conv(x, params['w_e'], params['b_e'], stride[3], 0),
               params['g_e'], params['be_e'])
    out = jax.nn.relu(bn(conv(x, params['w1'], params['b1'], stride[0], padding[0]),
                         params['g1'], params['be1']))
    out = jax.nn.relu(bn(conv(out, params['w2'], params['b2'], stride[1], padding[1]),
                         params['g2'], params['be2']))
    out = bn(conv(out, params['w3'], params['b3'], stride[2], padding[2]),
             params['g3'], params['be3'])
    return jax.nn.relu(short + out)


if __name__ == "__main__":
    in_channel = 4
    outs = [4, 4, 8]
    kernel_size = [1, 3, 1]
    stride = [1, 2, 1, 2]        # classic down block: 3x3 and shortcut stride 2
    padding = [0, 1, 0]
    N, H, W = 2, 16, 16

    key = jax.random.PRNGKey(0)
    ks = jax.random.split(key, 17)

    def nrm(k, shape, scale=0.1):
        return scale * jax.random.normal(k, shape, jnp.float32)

    params = {
        'w1': nrm(ks[0], (outs[0], in_channel, kernel_size[0], kernel_size[0])),
        'b1': nrm(ks[1], (outs[0],)),
        'g1': 1.0 + nrm(ks[2], (outs[0],)),
        'be1': nrm(ks[3], (outs[0],)),
        'w2': nrm(ks[4], (outs[1], outs[0], kernel_size[1], kernel_size[1])),
        'b2': nrm(ks[5], (outs[1],)),
        'g2': 1.0 + nrm(ks[6], (outs[1],)),
        'be2': nrm(ks[7], (outs[1],)),
        'w3': nrm(ks[8], (outs[2], outs[1], kernel_size[2], kernel_size[2])),
        'b3': nrm(ks[9], (outs[2],)),
        'g3': 1.0 + nrm(ks[10], (outs[2],)),
        'be3': nrm(ks[11], (outs[2],)),
        'w_e': nrm(ks[12], (outs[2], in_channel, 1, 1)),
        'b_e': nrm(ks[13], (outs[2],)),
        'g_e': 1.0 + nrm(ks[14], (outs[2],)),
        'be_e': nrm(ks[15], (outs[2],)),
    }
    x = jax.random.normal(ks[16], (N, in_channel, H, W), jnp.float32)

    out = resnet101_down_block(x, params, kernel_size, stride, padding)
    out = jax.block_until_ready(out)

    ref = ref_forward(x, params, kernel_size, stride, padding)
    assert out.shape == ref.shape, (out.shape, ref.shape)
    max_err = float(jnp.max(jnp.abs(out - ref)))
    # bf16 MXU inputs vs f32/HIGHEST reference -> looser tolerance.
    assert jnp.allclose(out, ref, atol=1e-1, rtol=1e-1), max_err
    print("KERNEL_OK")
</pallas_src>

<mosaic_0001>
module attributes {stable_mosaic.version = 11 : i64} {
  func.func @_mm_stats_kernel(%arg0: i32, %arg1: i32, %arg2: memref<256x128xbf16, #tpu.memory_space<vmem>>, %arg3: memref<128x128xbf16, #tpu.memory_space<vmem>>, %arg4: memref<256x128xbf16, #tpu.memory_space<vmem>>, %arg5: memref<1x2x128xf32, #tpu.memory_space<vmem>>) attributes {dimension_semantics = [#tpu.dimension_semantics<parallel>, #tpu.dimension_semantics<parallel>], iteration_bounds = array<i64: 1, 2>, scalar_prefetch = 0 : i64, scratch_operands = 0 : i64, tpu.core_type = #tpu.core_type<tc>, window_params = [{transform_indices = @transform_0, window_bounds = array<i64: 256, 128>}, {transform_indices = @transform_1, window_bounds = array<i64: 128, 128>}, {transform_indices = @transform_2, window_bounds = array<i64: 256, 128>}, {transform_indices = @transform_3, window_bounds = array<i64: 1, 2, 128>}]} {
    %c0 = arith.constant 0 : index
    %c0_0 = arith.constant 0 : index
    %0 = vector.load %arg2[%c0, %c0_0] : memref<256x128xbf16, #tpu.memory_space<vmem>>, vector<256x128xbf16>
    %c0_1 = arith.constant 0 : index
    %c0_2 = arith.constant 0 : index
    %1 = vector.load %arg3[%c0_1, %c0_2] : memref<128x128xbf16, #tpu.memory_space<vmem>>, vector<128x128xbf16>
    %cst = arith.constant dense<0.000000e+00> : vector<256x128xf32>
    %2 = tpu.matmul %0, %1, %cst {dimension_numbers = #tpu.dot_dimension_numbers<[1], [0], [0], [1], [0, 0, 1, 1], [], []>} : vector<256x128xbf16>, vector<128x128xbf16>, vector<256x128xf32> -> vector<256x128xf32>
    %3 = arith.truncf %2 : vector<256x128xf32> to vector<256x128xbf16>
    %c0_3 = arith.constant 0 : index
    %c0_4 = arith.constant 0 : index
    %4 = vector.load %arg4[%c0_3, %c0_4] : memref<256x128xbf16, #tpu.memory_space<vmem>>, vector<256x128xbf16>
    tpu.vector_store %arg4[%c0_3, %c0_4], %3 {strides = array<i32>} : memref<256x128xbf16, #tpu.memory_space<vmem>>, vector<256x128xbf16>,
    %cst_5 = arith.constant dense<0.000000e+00> : vector<128xf32>
    %5 = vector.multi_reduction <add>, %2, %cst_5 [0] : vector<256x128xf32> to vector<128xf32>
    %6 = vector.shape_cast %5 : vector<128xf32> to vector<1x128xf32>
    %c0_6 = arith.constant 0 : index
    %c0_7 = arith.constant 0 : index
    %c0_8 = arith.constant 0 : index
    %7 = vector.load %arg5[%c0_6, %c0_7, %c0_8] : memref<1x2x128xf32, #tpu.memory_space<vmem>>, vector<1x1x128xf32>
    %8 = vector.shape_cast %7 : vector<1x1x128xf32> to vector<1x128xf32>
    %9 = vector.shape_cast %6 : vector<1x128xf32> to vector<1x1x128xf32>
    tpu.vector_store %arg5[%c0_6, %c0_7, %c0_8], %9 {strides = array<i32>} : memref<1x2x128xf32, #tpu.memory_space<vmem>>, vector<1x1x128xf32>,
    %10 = arith.mulf %2, %2 : vector<256x128xf32>
    %cst_9 = arith.constant dense<0.000000e+00> : vector<128xf32>
    %11 = vector.multi_reduction <add>, %10, %cst_9 [0] : vector<256x128xf32> to vector<128xf32>
    %12 = vector.shape_cast %11 : vector<128xf32> to vector<1x128xf32>
    %c0_10 = arith.constant 0 : index
    %c1 = arith.constant 1 : index
    %c0_11 = arith.constant 0 : index
    %13 = vector.load %arg5[%c0_10, %c1, %c0_11] : memref<1x2x128xf32, #tpu.memory_space<vmem>>, vector<1x1x128xf32>
    %14 = vector.shape_cast %13 : vector<1x1x128xf32> to vector<1x128xf32>
    %15 = vector.shape_cast %12 : vector<1x128xf32> to vector<1x1x128xf32>
    tpu.vector_store %arg5[%c0_10, %c1, %c0_11], %15 {strides = array<i32>} : memref<1x2x128xf32, #tpu.memory_space<vmem>>, vector<1x1x128xf32>,
    return
  }
  func.func @transform_0(%arg0: i32, %arg1: i32) -> (i32, i32) {
    %c0_i32 = arith.constant 0 : i32
    %c0_i32_0 = arith.constant 0 : i32
    return %arg1, %c0_i32 : i32, i32
  }
  func.func @transform_1(%arg0: i32, %arg1: i32) -> (i32, i32) {
    %c0_i32 = arith.constant 0 : i32
    %c0_i32_0 = arith.constant 0 : i32
    return %c0_i32, %arg0 : i32, i32
  }
  func.func @transform_2(%arg0: i32, %arg1: i32) -> (i32, i32) {
    %c0_i32 = arith.constant 0 : i32
    return %arg1, %arg0 : i32, i32
  }
  func.func @transform_3(%arg0: i32, %arg1: i32) -> (i32, i32, i32) {
    %c0_i32 = arith.constant 0 : i32
    %c0_i32_0 = arith.constant 0 : i32
    return %arg1, %c0_i32, %arg0 : i32, i32, i32
  }
}

</mosaic_0001>

<bundles_post_ra>
// kernel: tpu_custom_call.1
= control target key start
LH: loop header
LB: loop body
LE: loop exit
PB: predicated region body
PF: predicated region fallthrough
CT: control target
= control target key end

     0   :  { %9 = vsyncpa [#allocation3], 0  ;;  %s1963_s0 = inlined_call_operand.hbm [shape: bf16[512,128], index: 0, kind: input, shape index: {}]   ;;  %s1964_s1 = inlined_call_operand.hbm [shape: bf16[128,128], index: 1, kind: input, shape index: {}]   ;;  %s1965_s2 = inlined_call_operand.hbm [shape: bf16[512,128], index: 2, kind: output, shape index: {0}]   ;;  %s1966_s3 = inlined_call_operand.hbm [shape: f32[2,2,128], index: 3, kind: output, shape index: {1}]  }
   0x1   :  { %11 = vsyncpa [#allocation3 + $0x1], 0 }
   0x2   :  { %12 = vsyncpa [#allocation6], 0 }
   0x3   :  { %13 = vsyncpa [#allocation4], 0 }
   0x4   :  { %15 = vsyncpa [#allocation4 + $0x1], 0 }
   0x5   :  { %16 = vsyncpa [#allocation9], 0 }
   0x6   :  { %18 = vsyncpa [#allocation9 + $0x1], 0  ;;  %s1621_s12 = smov 0   ;;  %s1623_s13 = smov 0  }
   0x7   :  { %s1625_s14 = smov 0   ;;  %s1627_s15 = smov 0  }
   0x8   :  { %s1629_s16 = smov 0   ;;  %s1631_s17 = smov 0  }
   0x9 LB: > { %s1024_s18 = sadd.s32 4294967295, %s1591_s17   ;;  %s1025_s19 = sadd.s32 4294967294, %s1591_s17   ;;  %s1591_s17 = sphi %s1631_s17, %s24_s17   ;;  %s1587_s16 = sphi %s1629_s16, %s1988_s16   ;;  %s1583_s15 = sphi %s1627_s15, %s1987_s15   ;;  %s1579_s14 = sphi %s1625_s14, %s1986_s14   ;;  %s1575_s13 = sphi %s1623_s13, %s1985_s13   ;;  %s1571_s12 = sphi %s1621_s12, %s1984_s12  }
   0xa   : > { %p56_p0 = scmp.ne.s32.totalorder %s1575_s13, %s1571_s12  ;;  %p1655_p1 = scmp.eq.s32.totalorder %s1024_s18, 0 }
   0xb   : > { %p1659_p2 = scmp.eq.s32.totalorder %s1024_s18, 1  ;;  %p114_p3 = scmp.eq.s32.totalorder %s1025_s19, 1 }
   0xc   : > { %p1665_p4 = por %p1655_p1, %p56_p0  ;;  %p1026_p5 = scmp.ge.s32.totalorder %s1591_s17, 1 }
   0xd   : > { %p1670_p6 = por %p114_p3, %p56_p0  ;;  %p149_p7 = scmp.lt.s32.totalorder %s1591_s17, 3 }
   0xe   : > { %s1972_s22 = scalar_select %p1665_p4, 1, 0 }
   0xf   : > { %s1973_s23 = scalar_select %p1670_p6, 1, 0 }
  0x10   : > { %p1675_p8 = pnand %p1026_p5, %p149_p7  ;;  %s1593_s25 = smov [#allocation5]  }
  0x11   : > { %s163_s26 = sshll.u32 %s1593_s25, 4  ;;  %s33_s28 = sadd.s32 1, %s1587_s16  ;;  %s164_s26 = int_to_ptr.vmem [resolvable:$true] %s163_s26 }
  0x12   : > { %p1327_p9 = pneg %p1675_p8  ;;  %s1434_s29 = scalar_lea.vmem %s164_s26, 1024 }
  0x13   : > { %p1435_p13 = scmp.ne.s32.totalorder %s164_s26, %s1434_s29  ;;  %p1442_p5 = scmp.lt.s32.totalorder %s164_s26, %s164_s26 }
  0x14   : > { %p1684_p11 = pnand %p1327_p9, %p1655_p1  ;;  %p1443_p7 = scmp.lt.s32.totalorder %s1434_s29, %s1434_s29 }
  0x16   : > { %p1425_p12 = pneg %p1684_p11  ;;  %p1444_p6 = por %p1443_p7, %p1442_p5 }
  0x18   : > { %p1437_p0 = pnand %p1435_p13, %p1425_p12 }
  0x1a   : > { %p1438_p3 = pneg %p1437_p0 }
  0x1c   : > { %p1445_p4 = pnand %p1444_p6, %p1438_p3 }
  0x1e   : > { %1448 = shalt.err (!%p1445_p4)
}
  0x1f   : > { %s1968_s30 = smov 64   ;;  %s1969_s4 = smov 4  }
  0x20   : > { %1330 = dma.hbm_to_vmem [thread:$0]  (!%p1684_p11), %s1964_s1, 1024, %s164_s26, [#allocation6], %s1968_s30, %s1968_s30, %s1969_s4  }
  0x21   : > { %p34_p4 = scmp.ge.s32.totalorder %s33_s28, 2  ;;  %s43_s7 = sadd.s32 1, %s1579_s14 }
  0x22   : > { %p50_p6 = scmp.ne.s32.totalorder %s1579_s14, %s1575_s13  ;;  %p51_p9 = scmp.eq.s32.totalorder %s1591_s17, 0 }
  0x23   : > { %s1990_s28 = smov (%p34_p4, %s33_s28), 0  ;;  %p1343_p0 = scmp.lt.s32.totalorder %s1591_s17, 2 }
  0x24   : > { %p1705_p12 = por %p51_p9, %p50_p6  ;;  %p1711_p13 = por %p1659_p2, %p50_p6 }
  0x25   : > { %s40_s10 = ssub.s32 %s1587_s16, %s1990_s28  ;;  %s177_s11 = sand.u32 1, %s1579_s14  }
  0x26   : > { %p41_p11 = scmp.eq.s32.totalorder %s40_s10, 0  ;;  %s1029_s18 = sshll.u32 %s177_s11, 7 }
  0x27   : > { %s1100_s25 = sshll.u32 %s1587_s16, 11  ;;  %s181_s5 = scalar_lea.vmem [#allocation2], %s1029_s18 }
  0x28   : > { %s1720_s19 = scalar_select %p41_p11, %s1579_s14, %s43_s7  }
  0x29   : > { %s187_s29 = scalar_lea.hbm %s1963_s0, %s1100_s25  ;;  %s188_s6 = sshll.u32 %s181_s5, 4  ;;  %s189_s6 = int_to_ptr.vmem [resolvable:$true] %s188_s6 }
  0x2a   : > { %p1728_p2 = pnand %p1343_p0, %p1705_p12  ;;  %s178_s30 = scalar_lea.sflag [#allocation3], %s177_s11 }
  0x2b   : > { %s1462_s10 = scalar_lea.vmem %s189_s6, 2048  ;;  %s1596_s7 = smov [#allocation2]  }
  0x2c   : > { %p1451_p3 = pneg %p1728_p2  ;;  %p1463_p5 = scmp.ne.s32.totalorder %s189_s6, %s1462_s10 }
  0x2d   : > { %s1467_s4 = sshll.u32 %s1596_s7, 4  ;;  %s1468_s4 = int_to_ptr.vmem [resolvable:$false] %s1467_s4 }
  0x2e   : > { %p1465_p7 = pnand %p1463_p5, %p1451_p3  ;;  %s1469_s25 = scalar_lea.vmem %s1468_s4, 4096 }
  0x2f   : > { %p1470_p6 = scmp.lt.s32.totalorder %s189_s6, %s1468_s4  ;;  %p1471_p9 = scmp.lt.s32.totalorder %s1469_s25, %s1462_s10 }
  0x30   : > { %p1466_p4 = pneg %p1465_p7 }
  0x31   : > { %p1472_p11 = por %p1471_p9, %p1470_p6 }
  0x33   : > { %p1473_p10 = pnand %p1472_p11, %p1466_p4 }
  0x35   : > { %1476 = shalt.err (!%p1473_p10)
}
  0x36   : > { %s1979_s8 = smov 4   ;;  %s1980_s18 = smov 64  }
  0x37   : > { %1334 = dma.hbm_to_vmem [thread:$0]  (!%p1728_p2), %s187_s29, 2048, %s189_s6, %s178_s30, %s1980_s18, %s1980_s18, %s1979_s8  }
  0x38   : > { %200 = sbr.rel (%p1675_p8) target bundleno = 395 (0x18b), region = 28  ;;  %s1742_s11 = sand.u32 (!%p1675_p8), 1, %s1575_s13  }
  0x39   : > { %s1033_s4 = sshll.u32 (!%p1675_p8), %s1742_s11, 7  ;;  %s203_s26 = scalar_lea.sflag (!%p1675_p8), [#allocation3], %s1742_s11 }
  0x3a   : > { %s1748_s27 = scalar_lea.vmem (!%p1675_p8), [#allocation2], %s1033_s4  ;;  %p1981_p10 = scmp.ne.s32.totalorder (!%p1675_p8), %s1972_s22, 0 }
  0x3d   : > { %1554 = dma.done.wait (%p1981_p10), %s203_s26, 2048  }
  0x3e   : > { %1556 = vsyncadd (%p1981_p10), %s203_s26, 4294965248 }
  0x3f   : > { %1558 = dma.done.wait (%p1655_p1), [#allocation6], 1024  }
  0x40   : > { %1560 = vsyncadd (%p1655_p1), [#allocation6], 4294966272  ;;  %v1399_v0 = vld [vmem:[#allocation5 + $0x38] sm:$0xff]   ;;  %v1400_v1 = vld [vmem:[#allocation5 + $0x30] sm:$0xff]   ;;  %s1786_s20 = scalar_lea.vmem [#allocation7], %s1033_s4  ;;  %s1133_s22 = sshll.u32 %s1583_s15, 11 }
  0x41   : > { %1253 = vmatprep.subr.bf16.mxu0 %v1399_v0  ;;  %1301 = vmatprep.subr.bf16.mxu1 %v1399_v0  ;;  %v1401_v2 = vld [vmem:[#allocation5 + $0x28] sm:$0xff]   ;;  %v1402_v3 = vld [vmem:[#allocation5 + $0x20] sm:$0xff]   ;;  %v1403_v5 = vld [vmem:[#allocation5 + $0x18] sm:$0xff]   ;;  %s882_s24 = sshll.u32 %s1786_s20, 4  ;;  %s1842_s5 = scalar_lea.hbm %s1965_s2, %s1133_s22  ;;  %s1844_s24 = int_to_ptr.vmem [resolvable:$true] %s882_s24 }
  0x42   : > { %1254 = vmatpush3.bf16.msra.mxu0 %v1399_v0  ;;  %1309 = vmatpush3.bf16.msra.mxu1 %v1399_v0  ;;  %v1407_v4 = vld [vmem:[%s1748_s27] sm:$0xff]   ;;  %v1404_v6 = vld [vmem:[#allocation5 + $0x10] sm:$0xff]   ;;  %v1405_v8 = vld [vmem:[#allocation5 + $0x8] sm:$0xff]   ;;  %s863_s6 = scalar_lea.sflag [#allocation4], %s1742_s11  ;;  %s1477_s21 = scalar_lea.vmem %s1844_s24, 2048 }
  0x43   : > { %1255 = vmatprep.subr.bf16.mxu0 %v1400_v1  ;;  %1302 = vmatprep.subr.bf16.mxu1 %v1400_v1  ;;  %v1415_v7 = vld [vmem:[%s1748_s27 + $0x40] sm:$0xff]   ;;  %v1408_v10 = vld [vmem:[%s1748_s27 + $0x8] sm:$0xff]   ;;  %v1409_v12 = vld [vmem:[%s1748_s27 + $0x10] sm:$0xff]   ;;  %p1478_p1 = scmp.ne.s32.totalorder %s1844_s24, %s1477_s21  ;;  %s1597_s10 = smov [#allocation7]  }
  0x44   : > { %1269 = vmatprep.mubr.bf16.mxu0 %v1407_v4  ;;  %1285 = vmatprep.mubr.bf16.mxu1 %v1415_v7  ;;  %v1406_v9 = vld [vmem:[#allocation5] sm:$0xff]   ;;  %v1416_v11 = vld [vmem:[%s1748_s27 + $0x48] sm:$0xff]   ;;  %v1417_v13 = vld [vmem:[%s1748_s27 + $0x50] sm:$0xff]   ;;  %s1481_s7 = sshll.u32 %s1597_s10, 4  ;;  %s1482_s7 = int_to_ptr.vmem [resolvable:$false] %s1481_s7 }
  0x45   : > { %v1410_v14 = vld [vmem:[%s1748_s27 + $0x18] sm:$0xff]   ;;  %v1411_v16 = vld [vmem:[%s1748_s27 + $0x20] sm:$0xff]   ;;  %v1412_v18 = vld [vmem:[%s1748_s27 + $0x28] sm:$0xff]   ;;  %p1479_p8 = pnand %p1478_p1, %p1711_p13  ;;  %s1483_s25 = scalar_lea.vmem %s1482_s7, 4096 }
  0x46   : > { %1256 = vmatpush3.bf16.msra.mxu0 %v1400_v1  ;;  %1310 = vmatpush3.bf16.msra.mxu1 %v1400_v1  ;;  %v1418_v15 = vld [vmem:[%s1748_s27 + $0x58] sm:$0xff]   ;;  %v1419_v17 = vld [vmem:[%s1748_s27 + $0x60] sm:$0xff]   ;;  %v1420_v19 = vld [vmem:[%s1748_s27 + $0x68] sm:$0xff]   ;;  %p1484_p0 = scmp.lt.s32.totalorder %s1844_s24, %s1482_s7  ;;  %p1485_p2 = scmp.lt.s32.totalorder %s1483_s25, %s1477_s21 }
  0x47   : > { %1257 = vmatprep.subr.bf16.mxu0 %v1401_v2  ;;  %1303 = vmatprep.subr.bf16.mxu1 %v1401_v2  ;;  %v1413_v20 = vld [vmem:[%s1748_s27 + $0x30] sm:$0xff]   ;;  %v1414_v22 = vld [vmem:[%s1748_s27 + $0x38] sm:$0xff]   ;;  %p1480_p12 = pneg %p1479_p8 }
  0x48   : > { %v1421_v21 = vld [vmem:[%s1748_s27 + $0x70] sm:$0xff]   ;;  %v1422_v23 = vld [vmem:[%s1748_s27 + $0x78] sm:$0xff]   ;;  %p1486_p3 = por %p1485_p2, %p1484_p0 }
  0x4a   : > { %1258 = vmatpush3.bf16.msra.mxu0 %v1401_v2  ;;  %1311 = vmatpush3.bf16.msra.mxu1 %v1401_v2  ;;  %p1487_p5 = pnand %p1486_p3, %p1480_p12 }
  0x4b   : > { %1259 = vmatprep.subr.bf16.mxu0 %v1402_v3  ;;  %1304 = vmatprep.subr.bf16.mxu1 %v1402_v3 }
  0x4e   : > { %1260 = vmatpush3.bf16.msra.mxu0 %v1402_v3  ;;  %1312 = vmatpush3.bf16.msra.mxu1 %v1402_v3 }
  0x4f   : > { %1261 = vmatprep.subr.bf16.mxu0 %v1403_v5  ;;  %1305 = vmatprep.subr.bf16.mxu1 %v1403_v5 }
  0x52   : > { %1262 = vmatpush3.bf16.msra.mxu0 %v1403_v5  ;;  %1313 = vmatpush3.bf16.msra.mxu1 %v1403_v5 }
  0x53   : > { %1263 = vmatprep.subr.bf16.mxu0 %v1404_v6  ;;  %1306 = vmatprep.subr.bf16.mxu1 %v1404_v6 }
  0x56   : > { %1264 = vmatpush3.bf16.msra.mxu0 %v1404_v6  ;;  %1314 = vmatpush3.bf16.msra.mxu1 %v1404_v6 }
  0x57   : > { %1265 = vmatprep.subr.bf16.mxu0 %v1405_v8  ;;  %1307 = vmatprep.subr.bf16.mxu1 %v1405_v8 }
  0x5a   : > { %1266 = vmatpush3.bf16.msra.mxu0 %v1405_v8  ;;  %1315 = vmatpush3.bf16.msra.mxu1 %v1405_v8 }
  0x5b   : > { %1267 = vmatprep.subr.bf16.mxu0 %v1406_v9  ;;  %1308 = vmatprep.subr.bf16.mxu1 %v1406_v9 }
  0x5e   : > { %1268 = vmatpush3.bf16.msra.mxu0 %v1406_v9  ;;  %1316 = vmatpush3.bf16.msra.mxu1 %v1406_v9 }
  0x61   : > { %1270 = vmatmul.mubr.bf16.vlgmr.msra.gmra.mxu0 %v1408_v10  ;;  %1286 = vmatmul.mubr.bf16.vlgmr.msra.gmra.mxu1 %v1416_v11 }
  0x62   : > { %1273 = vmatprep.mubr.bf16.mxu0 %v1409_v12  ;;  %1289 = vmatprep.mubr.bf16.mxu1 %v1417_v13 }
  0x69   : > { %1274 = vmatmul.mubr.bf16.gmra.mxu0 %v1410_v14  ;;  %1290 = vmatmul.mubr.bf16.gmra.mxu1 %v1418_v15 }
  0x6a   : > { %1277 = vmatprep.mubr.bf16.mxu0 %v1411_v16  ;;  %1293 = vmatprep.mubr.bf16.mxu1 %v1419_v17 }
  0x71   : > { %1278 = vmatmul.mubr.bf16.gmra.mxu0 %v1412_v18  ;;  %1294 = vmatmul.mubr.bf16.gmra.mxu1 %v1420_v19 }
  0x72   : > { %1281 = vmatprep.mubr.bf16.mxu0 %v1413_v20  ;;  %1297 = vmatprep.mubr.bf16.mxu1 %v1421_v21 }
  0x79   : > { %1282 = vmatmul.mubr.bf16.gmra.mxu0 %v1414_v22  ;;  %1298 = vmatmul.mubr.bf16.gmra.mxu1 %v1422_v23 }
 0x121   : > { %v1271_v24 = vpop.f32.mrf.mxu0  ;;  %v1774_v25 = vpop.f32.mrf.mxu1 }
 0x122   : > { %v794_v41 = vmul.f32 %v1271_v24, %v1271_v24 }
 0x123   : > { %v467_v26 = vpop.f32.mrf.mxu0  ;;  %v1776_v27 = vpop.f32.mrf.mxu1 }
 0x124   : > { %v792_v32 = vmul.f32 %v467_v26, %v467_v26 }
 0x125   : > { %v1272_v28 = vpop.f32.mrf.mxu0  ;;  %v1778_v29 = vpop.f32.mrf.mxu1 }
 0x126   : > { %v1142_v30 = vpack.c.bf16 %v1272_v28, %v1271_v24  ;;  %v1182_v31 = vpack.c.bf16 %v1778_v29, %v1774_v25  ;;  %v795_v46 = vmul.f32 %v1272_v28, %v1272_v28 }
 0x127   : > { %v470_v33 = vpop.f32.mrf.mxu0  ;;  %v1782_v34 = vpop.f32.mrf.mxu1 }
 0x128   : > { %1214 = vst [vmem:[%s1786_s20 + $0x8] sm:$0xff] %v1142_v30   ;;  %v1137_v35 = vpack.c.bf16 %v470_v33, %v467_v26  ;;  %v754_v36 = vadd.f32 %v470_v33, %v467_v26  ;;  %v793_v37 = vmul.f32 %v470_v33, %v470_v33  ;;  %1222 = vst [vmem:[%s1786_s20 + $0x48] sm:$0xff] %v1182_v31  }
 0x129   : > { %v1177_v38 = vpack.c.bf16 %v1782_v34, %v1776_v27  ;;  %v1275_v39 = vpop.f32.mrf.mxu0  ;;  %v1792_v40 = vpop.f32.mrf.mxu1 }
 0x12a   : > { %1138 = vst [vmem:[%s1786_s20] sm:$0xff] %v1137_v35   ;;  %v755_v42 = vadd.f32 %v1271_v24, %v754_v36  ;;  %v824_v43 = vadd.f32 %v793_v37, %v792_v32  ;;  %v798_v1 = vmul.f32 %v1275_v39, %v1275_v39 }
 0x12b   : > { %1221 = vst [vmem:[%s1786_s20 + $0x40] sm:$0xff] %v1177_v38   ;;  %v483_v44 = vpop.f32.mrf.mxu0  ;;  %v1796_v45 = vpop.f32.mrf.mxu1 }
 0x12c   : > { %v825_v47 = vadd.f32 %v824_v43, %v794_v41  ;;  %v756_v48 = vadd.f32 %v1272_v28, %v755_v42  ;;  %v796_v52 = vmul.f32 %v483_v44, %v483_v44 }
 0x12d   : > { %v1276_v49 = vpop.f32.mrf.mxu0  ;;  %v1798_v50 = vpop.f32.mrf.mxu1 }
 0x12e   : > { %v757_v51 = vadd.f32 %v756_v48, %v483_v44  ;;  %v826_v53 = vadd.f32 %v825_v47, %v795_v46  ;;  %v1152_v54 = vpack.c.bf16 %v1276_v49, %v1275_v39  ;;  %v1192_v56 = vpack.c.bf16 %v1798_v50, %v1792_v40 }
 0x12f   : > { %v486_v55 = vpop.f32.mrf.mxu0  ;;  %v1802_v57 = vpop.f32.mrf.mxu1  ;;  %v799_v6 = vmul.f32 %v1276_v49, %v1276_v49 }
 0x130   : > { %v827_v58 = vadd.f32 %v826_v53, %v796_v52  ;;  %1216 = vst [vmem:[%s1786_s20 + $0x18] sm:$0xff] %v1152_v54   ;;  %v1147_v59 = vpack.c.bf16 %v486_v55, %v483_v44  ;;  %v758_v60 = vadd.f32 %v757_v51, %v486_v55  ;;  %v797_v61 = vmul.f32 %v486_v55, %v486_v55 }
 0x131   : > { %v1279_v62 = vpop.f32.mrf.mxu0  ;;  %1224 = vst [vmem:[%s1786_s20 + $0x58] sm:$0xff] %v1192_v56   ;;  %v1187_v63 = vpack.c.bf16 %v1802_v57, %v1796_v45  ;;  %v1808_v0 = vpop.f32.mrf.mxu1 }
 0x132   : > { %1215 = vst [vmem:[%s1786_s20 + $0x10] sm:$0xff] %v1147_v59   ;;  %v759_v2 = vadd.f32 %v1275_v39, %v758_v60  ;;  %v828_v3 = vadd.f32 %v827_v58, %v797_v61  ;;  %v802_v26 = vmul.f32 %v1279_v62, %v1279_v62 }
 0x133   : > { %v499_v4 = vpop.f32.mrf.mxu0  ;;  %1223 = vst [vmem:[%s1786_s20 + $0x50] sm:$0xff] %v1187_v63   ;;  %v1812_v5 = vpop.f32.mrf.mxu1 }
 0x134   : > { %v829_v7 = vadd.f32 %v828_v3, %v798_v1  ;;  %v760_v8 = vadd.f32 %v1276_v49, %v759_v2  ;;  %v800_v12 = vmul.f32 %v499_v4, %v499_v4 }
 0x135   : > { %v1280_v9 = vpop.f32.mrf.mxu0  ;;  %v1814_v10 = vpop.f32.mrf.mxu1 }
 0x136   : > { %v761_v11 = vadd.f32 %v760_v8, %v499_v4  ;;  %v830_v13 = vadd.f32 %v829_v7, %v799_v6  ;;  %v1162_v14 = vpack.c.bf16 %v1280_v9, %v1279_v62  ;;  %v1202_v16 = vpack.c.bf16 %v1814_v10, %v1808_v0 }
 0x137   : > { %v502_v15 = vpop.f32.mrf.mxu0  ;;  %v1818_v17 = vpop.f32.mrf.mxu1  ;;  %v803_v33 = vmul.f32 %v1280_v9, %v1280_v9 }
 0x138   : > { %v831_v18 = vadd.f32 %v830_v13, %v800_v12  ;;  %1218 = vst [vmem:[%s1786_s20 + $0x28] sm:$0xff] %v1162_v14   ;;  %v1157_v19 = vpack.c.bf16 %v502_v15, %v499_v4  ;;  %v762_v20 = vadd.f32 %v761_v11, %v502_v15  ;;  %v801_v21 = vmul.f32 %v502_v15, %v502_v15 }
 0x139   : > { %v1283_v22 = vpop.f32.mrf.mxu0  ;;  %1226 = vst [vmem:[%s1786_s20 + $0x68] sm:$0xff] %v1202_v16   ;;  %v1197_v23 = vpack.c.bf16 %v1818_v17, %v1812_v5  ;;  %v1824_v24 = vpop.f32.mrf.mxu1 }
 0x13a   : > { %1217 = vst [vmem:[%s1786_s20 + $0x20] sm:$0xff] %v1157_v19   ;;  %v763_v28 = vadd.f32 %v1279_v62, %v762_v20  ;;  %v832_v30 = vadd.f32 %v831_v18, %v801_v21  ;;  %v806_v54 = vmul.f32 %v1283_v22, %v1283_v22 }
 0x13b   : > { %v515_v31 = vpop.f32.mrf.mxu0  ;;  %1225 = vst [vmem:[%s1786_s20 + $0x60] sm:$0xff] %v1197_v23   ;;  %v1828_v32 = vpop.f32.mrf.mxu1 }
 0x13c   : > { %v833_v35 = vadd.f32 %v832_v30, %v802_v26  ;;  %v764_v36 = vadd.f32 %v1280_v9, %v763_v28  ;;  %v804_v41 = vmul.f32 %v515_v31, %v515_v31 }
 0x13d   : > { %v1284_v37 = vpop.f32.mrf.mxu0  ;;  %v1830_v38 = vpop.f32.mrf.mxu1 }
 0x13e   : > { %v765_v39 = vadd.f32 %v764_v36, %v515_v31  ;;  %v834_v42 = vadd.f32 %v833_v35, %v803_v33  ;;  %v1172_v43 = vpack.c.bf16 %v1284_v37, %v1283_v22  ;;  %v1212_v46 = vpack.c.bf16 %v1830_v38, %v1824_v24 }
 0x13f   : > { %v518_v44 = vpop.f32.mrf.mxu0  ;;  %v1836_v47 = vpop.f32.mrf.mxu1  ;;  %v807_v58 = vmul.f32 %v1284_v37, %v1284_v37 }
 0x140   : > { %v835_v48 = vadd.f32 %v834_v42, %v804_v41  ;;  %1220 = vst [vmem:[%s1786_s20 + $0x38] sm:$0xff] %v1172_v43   ;;  %v1167_v49 = vpack.c.bf16 %v518_v44, %v515_v31  ;;  %v766_v51 = vadd.f32 %v765_v39, %v518_v44  ;;  %v805_v52 = vmul.f32 %v518_v44, %v518_v44 }
 0x141   : > { %1228 = vst [vmem:[%s1786_s20 + $0x78] sm:$0xff] %v1212_v46   ;;  %v1207_v53 = vpack.c.bf16 %v1836_v47, %v1828_v32 }
 0x142   : > { %1219 = vst [vmem:[%s1786_s20 + $0x30] sm:$0xff] %v1167_v49   ;;  %v767_v55 = vadd.f32 %v1283_v22, %v766_v51  ;;  %v836_v56 = vadd.f32 %v835_v48, %v805_v52 }
 0x143   : > { %1227 = vst [vmem:[%s1786_s20 + $0x70] sm:$0xff] %v1207_v53  }
 0x144   : > { %v768_v59 = vadd.f32 %v1284_v37, %v767_v55  ;;  %v837_v60 = vadd.f32 %v836_v56, %v806_v54 }
 0x145   : > { %1490 = shalt.err (!%p1487_p5)
}
 0x146   : > { %s1491_s8 = scalar_lea.hbm %s1842_s5, 2048  ;;  %s1495_s26 = scalar_lea.hbm %s1965_s2, 4096 }
 0x147   : > { %p1492_p7 = scmp.ne.s32.totalorder %s1842_s5, %s1491_s8  ;;  %p1496_p9 = scmp.lt.s32.totalorder %s1842_s5, %s1965_s2 }
 0x148   : > { %p1497_p11 = scmp.lt.s32.totalorder %s1495_s26, %s1491_s8 }
 0x149   : > { %p1493_p4 = pnand %p1492_p7, %p1711_p13 }
 0x14a   : > { %p1498_p10 = por %p1497_p11, %p1496_p9 }
 0x14b   : > { %p1494_p6 = pneg %p1493_p4 }
 0x14d   : > { %p1499_p1 = pnand %p1498_p10, %p1494_p6 }
 0x14f   : > { %1502 = shalt.err (!%p1499_p1)
}
 0x150   : > { %s1598_s22 = smov 64   ;;  %s1599_s30 = smov 4   ;;  %v808_v61 = vmul.f32 %v1776_v27, %v1776_v27  ;;  %v838_v62 = vadd.f32 %v837_v60, %v807_v58  ;;  %v769_v63 = vadd.f32 %v768_v59, %v1776_v27  ;;  %v809_v2 = vmul.f32 %v1782_v34, %v1782_v34 }
 0x151   : > { %1323 = dma.vmem_to_hbm [thread:$0]  (%p1711_p13), %s1844_s24, 2048, %s1842_s5, %s863_s6, %s1598_s22, %s1598_s22, %s1599_s30   ;;  %v810_v4 = vmul.f32 %v1774_v25, %v1774_v25  ;;  %v811_v8 = vmul.f32 %v1778_v29, %v1778_v29  ;;  %v812_v12 = vmul.f32 %v1796_v45, %v1796_v45  ;;  %v813_v15 = vmul.f32 %v1802_v57, %v1802_v57 }
 0x152   : > { %v770_v1 = vadd.f32 %v769_v63, %v1782_v34  ;;  %v839_v3 = vadd.f32 %v838_v62, %v808_v61  ;;  %v816_v21 = vmul.f32 %v1812_v5, %v1812_v5  ;;  %v817_v26 = vmul.f32 %v1818_v17, %v1818_v17  ;;  %s1036_s24 = sshll.u32 %s1742_s11, 1  ;;  %s1097_s29 = sshll.u32 %s1583_s15, 5 }
 0x153   : > { %v820_v35 = vmul.f32 %v1828_v32, %v1828_v32  ;;  %v822_v39 = vmul.f32 %v1824_v24, %v1824_v24  ;;  %v823_v42 = vmul.f32 %v1830_v38, %v1830_v38  ;;  %s237_s5 = scalar_lea.vmem [#allocation8], %s1036_s24  ;;  %s897_s7 = scalar_lea.hbm %s1966_s3, %s1097_s29 }
 0x154   : > { %v771_v6 = vadd.f32 %v1774_v25, %v770_v1  ;;  %v840_v7 = vadd.f32 %v839_v3, %v809_v2  ;;  %v814_v25 = vmul.f32 %v1792_v40, %v1792_v40  ;;  %s899_s6 = sshll.u32 %s237_s5, 4  ;;  %s868_s25 = scalar_lea.sflag [#allocation9], %s1742_s11  ;;  %s900_s6 = int_to_ptr.vmem [resolvable:$true] %s899_s6 }
 0x155   : > { %s1503_s8 = scalar_lea.vmem %s900_s6, 32  ;;  %s1600_s18 = smov [#allocation8]  }
 0x156   : > { %v841_v9 = vadd.f32 %v840_v7, %v810_v4  ;;  %v772_v11 = vadd.f32 %v1778_v29, %v771_v6  ;;  %v815_v29 = vmul.f32 %v1798_v50, %v1798_v50  ;;  %p1504_p8 = scmp.ne.s32.totalorder %s900_s6, %s1503_s8  ;;  %s1507_s15 = sshll.u32 %s1600_s18, 4  ;;  %s1508_s15 = int_to_ptr.vmem [resolvable:$false] %s1507_s15 }
 0x157   : > { %s1509_s4 = scalar_lea.vmem %s1508_s15, 64  ;;  %p1510_p2 = scmp.lt.s32.totalorder %s900_s6, %s1508_s15 }
 0x158   : > { %v773_v27 = vadd.f32 %v772_v11, %v1796_v45  ;;  %v842_v13 = vadd.f32 %v841_v9, %v811_v8  ;;  %p1505_p12 = pnand %p1504_p8, %p1711_p13  ;;  %p1511_p3 = scmp.lt.s32.totalorder %s1509_s4, %s1503_s8 }
 0x15a   : > { %v843_v34 = vadd.f32 %v842_v13, %v812_v12  ;;  %v774_v14 = vadd.f32 %v773_v27, %v1802_v57  ;;  %p1506_p0 = pneg %p1505_p12  ;;  %p1512_p5 = por %p1511_p3, %p1510_p2 }
 0x15c   : > { %v775_v16 = vadd.f32 %v1792_v40, %v774_v14  ;;  %v844_v18 = vadd.f32 %v843_v34, %v813_v15  ;;  %v818_v40 = vmul.f32 %v1808_v0, %v1808_v0  ;;  %p1513_p7 = pnand %p1512_p5, %p1506_p0 }
 0x15e   : > { %v845_v19 = vadd.f32 %v844_v18, %v814_v25  ;;  %v776_v20 = vadd.f32 %v1798_v50, %v775_v16  ;;  %v819_v50 = vmul.f32 %v1814_v10, %v1814_v10 }
 0x160   : > { %v777_v45 = vadd.f32 %v776_v20, %v1812_v5  ;;  %v846_v22 = vadd.f32 %v845_v19, %v815_v29 }
 0x162   : > { %v847_v23 = vadd.f32 %v846_v22, %v816_v21  ;;  %v778_v57 = vadd.f32 %v777_v45, %v1818_v17 }
 0x164   : > { %v779_v28 = vadd.f32 %v1808_v0, %v778_v57  ;;  %v848_v30 = vadd.f32 %v847_v23, %v817_v26  ;;  %v821_v0 = vmul.f32 %v1836_v47, %v1836_v47 }
 0x166   : > { %v849_v31 = vadd.f32 %v848_v30, %v818_v40  ;;  %v780_v33 = vadd.f32 %v1814_v10, %v779_v28 }
 0x168   : > { %v781_v5 = vadd.f32 %v780_v33, %v1828_v32  ;;  %v850_v36 = vadd.f32 %v849_v31, %v819_v50 }
 0x16a   : > { %v851_v17 = vadd.f32 %v850_v36, %v820_v35  ;;  %v782_v37 = vadd.f32 %v781_v5, %v1836_v47 }
 0x16c   : > { %v783_v41 = vadd.f32 %v1824_v24, %v782_v37  ;;  %v852_v10 = vadd.f32 %v851_v17, %v821_v0 }
 0x16e   : > { %v784_v43 = vadd.f32 %v1830_v38, %v783_v41  ;;  %v853_v32 = vadd.f32 %v852_v10, %v822_v39 }
 0x170   : > { %v785_v44 = vrot.slane %v784_v43, 4  ;;  %v854_v46 = vadd.f32 %v853_v32, %v823_v42 }
 0x172   : > { %v786_v48 = vadd.f32 %v785_v44, %v784_v43  ;;  %v855_v49 = vrot.slane %v854_v46, 4 }
 0x174   : > { %v787_v51 = vrot.slane %v786_v48, 2  ;;  %v856_v47 = vadd.f32 %v855_v49, %v854_v46 }
 0x176   : > { %v788_v52 = vadd.f32 %v787_v51, %v786_v48  ;;  %v857_v53 = vrot.slane %v856_v47, 2 }
 0x178   : > { %v789_v24 = vrot.slane %v788_v52, 1  ;;  %v858_v54 = vadd.f32 %v857_v53, %v856_v47 }
 0x17a   : > { %v790_v55 = vadd.f32 %v789_v24, %v788_v52  ;;  %v859_v56 = vrot.slane %v858_v54, 1 }
 0x17c   : > { %791 = vst [vmem:[%s237_s5] sm:$0x1] %v790_v55  ;;  %v860_v38 = vadd.f32 %v859_v56, %v858_v54 }
 0x17e   : > { %861 = vst [vmem:[%s237_s5 + $0x1] sm:$0x1] %v860_v38 }
 0x17f   : > { %1516 = shalt.err (!%p1513_p7)
}
 0x180   : > { %s1517_s26 = scalar_lea.hbm %s897_s7, 32  ;;  %s1521_s20 = scalar_lea.hbm %s1966_s3, 64 }
 0x181   : > { %p1518_p4 = scmp.ne.s32.totalorder %s897_s7, %s1517_s26  ;;  %p1522_p11 = scmp.lt.s32.totalorder %s897_s7, %s1966_s3 }
 0x182   : > { %p1523_p10 = scmp.lt.s32.totalorder %s1521_s20, %s1517_s26 }
 0x183   : > { %p1519_p6 = pnand %p1518_p4, %p1711_p13 }
 0x184   : > { %p1524_p1 = por %p1523_p10, %p1522_p11 }
 0x185   : > { %p1520_p9 = pneg %p1519_p6 }
 0x187   : > { %p1525_p8 = pnand %p1524_p1, %p1520_p9 }
 0x189   : > { %1528 = shalt.err (!%p1525_p8)
}
 0x18a   : > { %1324 = dma.vmem_to_hbm [thread:$0]  (%p1711_p13), %s900_s6, 32, %s897_s7, %s868_s25  }
 0x18b PF: > { %s911_s24 = sand.u32 1, %s1571_s12   ;;  %p1982_p12 = scmp.ne.s32.totalorder %s1973_s23, 0 }
 0x18c   : > { %p1983_p0 = scmp.ge.s32.totalorder %s1591_s17, 2  ;;  %s912_s29 = scalar_lea.sflag [#allocation4], %s911_s24 }
 0x18e   : > { %p1336_p2 = pnand %p1983_p0, %p1982_p12 }
 0x190   : > { %p1337_p3 = pneg %p1336_p2 }
 0x192   : > { %1562 = dma.done.wait (%p1337_p3), %s912_s29, 2048  }
 0x193   : > { %1564 = vsyncadd (%p1337_p3), %s912_s29, 4294965248  ;;  %s921_s5 = scalar_lea.sflag [#allocation9], %s911_s24 }
 0x194   : > { %1566 = dma.done.wait (%p1337_p3), %s921_s5, 32  }
 0x195   : > { %1568 = vsyncadd (%p1337_p3), %s921_s5, 4294967264  ;;  %s24_s17 = sadd.s32 1, %s1591_s17   ;;  %s1984_s12 = smov %s1575_s13 }
 0x196   : > { %p21_p5 = scmp.ge.s32.totalorder %s24_s17, 4   ;;  %s1985_s13 = smov %s1579_s14 }
 0x197   : > { %s1986_s14 = smov %s1720_s19  ;;  %s1987_s15 = smov %s1587_s16 }
 0x198   : > { %s1988_s16 = smov %s1990_s28  ;;  %23 = sbr.rel (!%p21_p5) target bundleno = 9 (0x9), region = 95 }
 0x19d   :  { %926 = vsyncpa [#allocation3], 1 }
 0x19e   :  { %928 = vsyncpa [#allocation3 + $0x1], 1 }
 0x19f   :  { %929 = vsyncpa [#allocation6], 1 }
 0x1a0   :  { %930 = vsyncpa [#allocation4], 1 }
 0x1a1   :  { %932 = vsyncpa [#allocation4 + $0x1], 1 }
 0x1a2   :  { %933 = vsyncpa [#allocation9], 1 }
 0x1a3   :  { %935 = vsyncpa [#allocation9 + $0x1], 1 }

</bundles_post_ra>
